<compile_context>
chip_gen: v5e
topology: v5e:2x2
jax: 0.10.0
libtpu: 0.0.40
codegen_flags: <defaults>
</compile_context>

<pallas_src>
import math

import jax
import jax.numpy as jnp
from jax.experimental import pallas as pl
from jax.experimental.pallas import tpu as pltpu


def _make_arcface_kernel(s, m, classnum, tile_n, has_inv_w):
    cos_m = math.cos(m)
    sin_m = math.sin(m)
    mm = sin_m * m                          # sin(m) * m  (easy-margin fallback)
    threshold = math.cos(math.pi - m)

    def kernel(*refs):
        if has_inv_w:
            label_ref, inv_en_ref, emb_ref, w_ref, inv_w_ref, out_ref = refs
        else:
            label_ref, inv_en_ref, emb_ref, w_ref, out_ref, inv_w_sc = refs

        j = pl.program_id(0)                # class-tile index (outer, parallel)
        b = pl.program_id(1)                # batch-tile index (inner, arbitrary)

        w = w_ref[...]                      # (E, tile_n), weight dtype (f32/bf16)

        if has_inv_w:
            inv_w = inv_w_ref[...]          # (1, tile_n) f32, precomputed/cached
        else:
            # Column 1/||w||: reduction on the MXU (ones @ w*w), once per weight
            # tile (the tile stays VMEM-resident across all batch tiles).
            @pl.when(b == 0)
            def _():
                ones = jnp.ones((8, w.shape[0]), dtype=w.dtype)
                ss = jnp.dot(ones, w * w, preferred_element_type=jnp.float32)
                inv_w_sc[...] = jax.lax.rsqrt(jnp.maximum(ss[0:1, :], 1e-30))
            inv_w = inv_w_sc[...]

        # MXU matmul on the raw (un-normalized) operands; f32 accumulation.
        raw = jnp.dot(emb_ref[...], w, preferred_element_type=jnp.float32)
        cos = jnp.clip(raw * inv_en_ref[...] * inv_w, -1.0, 1.0)   # (Bt, tile_n)

        labels = label_ref[...]                                    # (Bt, 1) int32
        col = j * tile_n + jax.lax.broadcasted_iota(jnp.int32, cos.shape, 1)
        target = (col == labels) & (labels < classnum)             # one-hot / empty
        # (col == labels) & (labels < classnum) also implies col < C, so padded
        # columns of the last (cdiv) tile can never be selected.

        # Margin math only at the label column: extract cos(theta_yi) with a
        # lane reduce, run sqrt/margin on a (Bt, 1) vector, apply with one select.
        cos_y = jnp.sum(jnp.where(target, cos, 0.0), axis=-1, keepdims=True)
        sin_y = jnp.sqrt(jnp.maximum(1.0 - cos_y * cos_y, 0.0))
        ctm = cos_y * cos_m - sin_y * sin_m
        ctm = jnp.where(cos_y - threshold <= 0.0, cos_y - mm, ctm)

        out_ref[...] = (jnp.where(target, ctm, cos) * s).astype(out_ref.dtype)

    return kernel


def _vmem_need(E, tile_n, block_b, w_isz, e_isz, o_isz, w_bufs):
    """Conservative per-kernel VMEM estimate (pipelined buffers + live temps)."""
    return (w_bufs * E * tile_n * w_isz          # weight tile buffers (dominant)
            + E * tile_n * w_isz                 # w*w temporary (column norm)
            + 2 * block_b * tile_n * o_isz       # output tile (double-buffered)
            + 4 * block_b * tile_n * 4           # live (Bt, tile_n) f32/i32 temps
            + 2 * block_b * E * e_isz            # embeddings tile
            + 2 * block_b * 8                    # label + 1/||emb||
            + 3 * tile_n * 4)                    # inv_w scratch / input


def _choose_tile_n(C, E, block_b, w_isz, e_isz, o_isz, budget, w_bufs):
    """Largest lane-dense class tile that fits the VMEM budget (cdiv grid)."""
    if C <= 128:
        return C                                  # single full-dim tile
    cap = -(-C // 128) * 128                      # round C up to the lane width
    for t in (8192, 4096, 2048, 1024, 512, 256, 128):
        if t > cap:
            continue
        if _vmem_need(E, t, block_b, w_isz, e_isz, o_isz, w_bufs) <= budget:
            return t
    return 128


def arcface_column_inv_norm(weight):
    """Optional precomputed (1, C) 1/||w_col||_2.

    Cache this across training/inference steps and pass it as `inv_w_norm` to
    remove the column-norm work from the kernel entirely.
    """
    w32 = weight.astype(jnp.float32)
    return jax.lax.rsqrt(
        jnp.maximum(jnp.sum(w32 * w32, axis=0, keepdims=True), 1e-30))


def arcface_forward(embeddings, label, weight, *, s=64.0, m=0.5,
                    tile_n=None, block_b=None, inv_w_norm=None,
                    out_dtype=jnp.float32, weight_buffers=None):
    """Pallas ArcFace forward.

    embeddings: (B, E) float (any float dtype; math is done in f32)
    label:      (B,)   int   (entries >= C are left un-margined, as in torch)
    weight:     (E, C) float32 or bfloat16 (bf16 halves the HBM weight stream)
    inv_w_norm: optional (1, C) or (C,) f32 cached column inverse norms
    """
    B, E = embeddings.shape
    E2, C = weight.shape
    assert E == E2, "weight must be (embedding_size, classnum)"

    # Hoisted out of the kernel: 1/||emb_i||_2 in f32, computed once per call.
    emb_f32 = embeddings.astype(jnp.float32)
    inv_emb_norm = jax.lax.rsqrt(
        jnp.maximum(jnp.sum(emb_f32 * emb_f32, axis=1, keepdims=True), 1e-30))

    # Stream the matmul in the weight dtype; norms / margin stay f32 in-kernel.
    emb_mm = embeddings.astype(weight.dtype)
    label2d = label.reshape(B, 1).astype(jnp.int32)

    # Batch tile: fill the MXU height, keep (Bt, tile_n) intermediates bounded.
    if block_b is None:
        block_b = B if B <= 256 else 256
    if block_b != B:
        block_b = max(8, (block_b // 8) * 8)      # sublane-aligned batch tiles
    num_b = pl.cdiv(B, block_b)

    # Per-generation VMEM capacity (v5e/v6e 128 MiB, v7x 64 MiB per core).
    vmem_cap = 64 << 20
    try:
        vmem_cap = int(pltpu.get_tpu_info().vmem_capacity_bytes)
    except Exception:
        pass
    budget = min(int(vmem_cap * 0.70), 90 << 20)

    w_isz = jnp.dtype(weight.dtype).itemsize
    e_isz = jnp.dtype(emb_mm.dtype).itemsize
    o_isz = jnp.dtype(out_dtype).itemsize
    w_bufs = weight_buffers if weight_buffers is not None else 2

    if tile_n is None:
        tile_n = _choose_tile_n(C, E, block_b, w_isz, e_isz, o_isz, budget, w_bufs)
    num_c = pl.cdiv(C, tile_n)

    need = _vmem_need(E, tile_n, block_b, w_isz, e_isz, o_isz, w_bufs)
    # Always set the scoped-VMEM limit (v5e's default is only 16 MiB) and cap
    # it safely below the physical capacity (64 MiB on v7x).
    vmem_limit = int(min(max(need + (8 << 20), 24 << 20),
                         int(vmem_cap * 0.85), 100 << 20))

    has_inv_w = inv_w_norm is not None
    kern = _make_arcface_kernel(s, m, C, tile_n, has_inv_w)

    if weight_buffers is not None and weight_buffers != 2:
        # Deeper weight pipelining (e.g. 3 on v7x once bf16 weights are in).
        w_spec = pl.BlockSpec((E, tile_n), lambda j, b: (0, j),
                              pipeline_mode=pl.Buffered(weight_buffers))
    else:
        w_spec = pl.BlockSpec((E, tile_n), lambda j, b: (0, j))

    in_specs = [
        pl.BlockSpec((block_b, 1), lambda j, b: (b, 0)),   # label
        pl.BlockSpec((block_b, 1), lambda j, b: (b, 0)),   # 1/||emb||
        pl.BlockSpec((block_b, E), lambda j, b: (b, 0)),   # embeddings
        w_spec,                                            # weight column tile
    ]
    operands = [label2d, inv_emb_norm, emb_mm, weight]
    scratch = [pltpu.VMEM((1, tile_n), jnp.float32)]       # cached 1/||w_col||
    if has_inv_w:
        in_specs.append(pl.BlockSpec((1, tile_n), lambda j, b: (0, j)))
        operands.append(jnp.reshape(inv_w_norm, (1, C)).astype(jnp.float32))
        scratch = []

    # NOTE(v7x): the "parallel" C axis is what lets the two TensorCores split
    # the class range.  TODO(synk): if a profile shows one idle core, switch to
    # an explicit core split via pl.core_map / pltpu.CORE_PARALLEL.
    return pl.pallas_call(
        kern,
        out_shape=jax.ShapeDtypeStruct((B, C), out_dtype),
        grid_spec=pltpu.PrefetchScalarGridSpec(
            num_scalar_prefetch=0,
            grid=(num_c, num_b),            # C outer, B inner -> weight read once
            in_specs=in_specs,
            out_specs=pl.BlockSpec((block_b, tile_n), lambda j, b: (b, j)),
            scratch_shapes=scratch),
        compiler_params=pltpu.CompilerParams(
            dimension_semantics=("parallel", "arbitrary"),
            vmem_limit_bytes=vmem_limit),
    )(*operands)


def arcface_reference(emb, label, w, *, s=64.0, m=0.5):
    """Pure-JAX reference mirroring the PyTorch forward."""
    emb = emb.astype(jnp.float32)
    w = w.astype(jnp.float32)
    emb_n = emb / jnp.linalg.norm(emb, ord=2, axis=1, keepdims=True)
    w_n = w / jnp.linalg.norm(w, ord=2, axis=0, keepdims=True)
    cos = jnp.clip(emb_n @ w_n, -1.0, 1.0)
    sin = jnp.sqrt(1.0 - cos * cos)
    ctm = cos * math.cos(m) - sin * math.sin(m)
    ctm = jnp.where((cos - math.cos(math.pi - m)) <= 0.0,
                    cos - math.sin(m) * m, ctm)
    col = jnp.arange(w.shape[1], dtype=jnp.int32)[None, :]
    target = (col == label[:, None]) & (label[:, None] < w.shape[1])
    return jnp.where(target, ctm, cos) * s


if __name__ == "__main__":
    # Small shapes consistent with the module ((E, C) weight, (B, E) inputs).
    # C is deliberately NOT a multiple of 128 to exercise the cdiv/masked grid.
    B, E, C = 8, 128, 1000
    s_scale, margin = 64.0, 0.5

    key = jax.random.PRNGKey(0)
    k_emb, k_w, k_lab = jax.random.split(key, 3)

    embeddings = jax.random.normal(k_emb, (B, E), dtype=jnp.float32)
    # uniform_(-1,1) init; the renorm/mul scaling is irrelevant after the
    # in-forward column l2 normalization.
    weight = jax.random.uniform(k_w, (E, C), minval=-1.0, maxval=1.0,
                                dtype=jnp.float32)
    label = jax.random.randint(k_lab, (B,), 0, C, dtype=jnp.int32)
    label = label.at[0].set(C)        # exercise the `label < classnum` filter

    ref = arcface_reference(embeddings, label, weight, s=s_scale, m=margin)

    # --- f32 weights, in-kernel (MXU) column norms, tight tolerance ---------
    # tile_n=512 forces a multi-step class grid (cdiv(1000, 512) == 2) with a
    # masked, overhanging last tile.
    out = arcface_forward(embeddings, label, weight, s=s_scale, m=margin,
                          tile_n=512)
    out = jax.block_until_ready(out)
    assert out.shape == (B, C) and out.dtype == jnp.float32
    assert jnp.allclose(out, ref, atol=1e-3, rtol=1e-3), "f32 mismatch vs reference"

    # --- bf16 weight streaming + cached column norms + bf16 output ----------
    w_bf16 = weight.astype(jnp.bfloat16)
    inv_w = arcface_column_inv_norm(w_bf16)
    ref16 = arcface_reference(embeddings, label, w_bf16.astype(jnp.float32),
                              s=s_scale, m=margin)
    out16 = arcface_forward(embeddings, label, w_bf16, s=s_scale, m=margin,
                            tile_n=512, inv_w_norm=inv_w,
                            out_dtype=jnp.bfloat16)
    out16 = jax.block_until_ready(out16)
    assert out16.shape == (B, C) and out16.dtype == jnp.bfloat16
    assert jnp.allclose(out16.astype(jnp.float32), ref16, atol=0.5), \
        "bf16 mismatch vs reference"

    print("KERNEL_OK")
</pallas_src>

<mosaic_0001>
module attributes {stable_mosaic.version = 11 : i64} {
  func.func @kernel(%arg0: i32, %arg1: i32, %arg2: memref<8x1xi32, #tpu.memory_space<vmem>>, %arg3: memref<8x1xf32, #tpu.memory_space<vmem>>, %arg4: memref<8x128xf32, #tpu.memory_space<vmem>>, %arg5: memref<128x512xf32, #tpu.memory_space<vmem>>, %arg6: memref<8x512xf32, #tpu.memory_space<vmem>>, %arg7: memref<1x512xf32, #tpu.memory_space<vmem>>) attributes {dimension_semantics = [#tpu.dimension_semantics<parallel>, #tpu.dimension_semantics<arbitrary>], iteration_bounds = array<i64: 2, 1>, scalar_prefetch = 0 : i64, scratch_operands = 1 : i64, tpu.core_type = #tpu.core_type<tc>, window_params = [{transform_indices = @transform_0, window_bounds = array<i64: 8, 1>}, {transform_indices = @transform_1, window_bounds = array<i64: 8, 1>}, {transform_indices = @transform_2, window_bounds = array<i64: 8, 128>}, {transform_indices = @transform_3, window_bounds = array<i64: 128, 512>}, {transform_indices = @transform_4, window_bounds = array<i64: 8, 512>}]} {
    %c0 = arith.constant 0 : index
    %c0_0 = arith.constant 0 : index
    %0 = vector.load %arg5[%c0, %c0_0] : memref<128x512xf32, #tpu.memory_space<vmem>>, vector<128x512xf32>
    %c0_i32 = arith.constant 0 : i32
    %1 = arith.cmpi eq, %arg1, %c0_i32 : i32
    %2 = arith.extui %1 : i1 to i32
    %c0_i32_1 = arith.constant 0 : i32
    %3 = arith.cmpi ne, %2, %c0_i32_1 : i32
    scf.if %3 {
      %cst_24 = arith.constant 1.000000e+00 : f32
      %55 = vector.broadcast %cst_24 : f32 to vector<8x128xf32>
      %56 = arith.mulf %0, %0 : vector<128x512xf32>
      %cst_25 = arith.constant dense<0.000000e+00> : vector<8x512xf32>
      %57 = tpu.matmul %55, %56, %cst_25 {dimension_numbers = #tpu.dot_dimension_numbers<[1], [0], [0], [1], [0, 0, 1, 1], [], []>} : vector<8x128xf32>, vector<128x512xf32>, vector<8x512xf32> -> vector<8x512xf32>
      %58 = vector.extract_strided_slice %57 {offsets = [0, 0], sizes = [1, 512], strides = [1, 1]} : vector<8x512xf32> to vector<1x512xf32>
      %cst_26 = arith.constant 1.000000e-30 : f32
      %59 = vector.broadcast %cst_26 : f32 to vector<1x512xf32>
      %60 = arith.maximumf %58, %59 : vector<1x512xf32>
      %61 = math.rsqrt %60 : vector<1x512xf32>
      %c0_27 = arith.constant 0 : index
      %c0_28 = arith.constant 0 : index
      %62 = vector.load %arg7[%c0_27, %c0_28] : memref<1x512xf32, #tpu.memory_space<vmem>>, vector<1x512xf32>
      tpu.vector_store %arg7[%c0_27, %c0_28], %61 {strides = array<i32>} : memref<1x512xf32, #tpu.memory_space<vmem>>, vector<1x512xf32>,
    } else {
    }
    %c0_2 = arith.constant 0 : index
    %c0_3 = arith.constant 0 : index
    %4 = vector.load %arg7[%c0_2, %c0_3] : memref<1x512xf32, #tpu.memory_space<vmem>>, vector<1x512xf32>
    %c0_4 = arith.constant 0 : index
    %c0_5 = arith.constant 0 : index
    %5 = vector.load %arg4[%c0_4, %c0_5] : memref<8x128xf32, #tpu.memory_space<vmem>>, vector<8x128xf32>
    %cst = arith.constant dense<0.000000e+00> : vector<8x512xf32>
    %6 = tpu.matmul %5, %0, %cst {dimension_numbers = #tpu.dot_dimension_numbers<[1], [0], [0], [1], [0, 0, 1, 1], [], []>} : vector<8x128xf32>, vector<128x512xf32>, vector<8x512xf32> -> vector<8x512xf32>
    %c0_6 = arith.constant 0 : index
    %c0_7 = arith.constant 0 : index
    %7 = vector.load %arg3[%c0_6, %c0_7] : memref<8x1xf32, #tpu.memory_space<vmem>>, vector<8x1xf32>
    %8 = vector.broadcast %7 : vector<8x1xf32> to vector<8x512xf32>
    %9 = arith.mulf %6, %8 : vector<8x512xf32>
    %10 = vector.broadcast %4 : vector<1x512xf32> to vector<8x512xf32>
    %11 = arith.mulf %9, %10 : vector<8x512xf32>
    %cst_8 = arith.constant -1.000000e+00 : f32
    %cst_9 = arith.constant 1.000000e+00 : f32
    %12 = vector.broadcast %cst_8 : f32 to vector<8x512xf32>
    %13 = arith.maximumf %12, %11 : vector<8x512xf32>
    %14 = vector.broadcast %cst_9 : f32 to vector<8x512xf32>
    %15 = arith.minimumf %14, %13 : vector<8x512xf32>
    %c0_10 = arith.constant 0 : index
    %c0_11 = arith.constant 0 : index
    %16 = vector.load %arg2[%c0_10, %c0_11] : memref<8x1xi32, #tpu.memory_space<vmem>>, vector<8x1xi32>
    %c512_i32 = arith.constant 512 : i32
    %17 = arith.muli %arg0, %c512_i32 : i32
    %18 = tpu.iota {dimensions = array<i32: 1>} : vector<8x512xi32>
    %19 = vector.broadcast %17 : i32 to vector<8x512xi32>
    %20 = arith.addi %19, %18 : vector<8x512xi32>
    %21 = vector.broadcast %16 : vector<8x1xi32> to vector<8x512xi32>
    %22 = arith.cmpi eq, %20, %21 : vector<8x512xi32>
    %c1000_i32 = arith.constant 1000 : i32
    %23 = vector.broadcast %c1000_i32 : i32 to vector<8x1xi32>
    %24 = arith.cmpi slt, %16, %23 : vector<8x1xi32>
    %25 = vector.broadcast %24 : vector<8x1xi1> to vector<8x512xi1>
    %26 = arith.andi %22, %25 : vector<8x512xi1>
    %cst_12 = arith.constant 0.000000e+00 : f32
    %27 = vector.broadcast %cst_12 : f32 to vector<8x512xf32>
    %28 = arith.select %26, %15, %27 : vector<8x512xi1>, vector<8x512xf32>
    %cst_13 = arith.constant dense<0.000000e+00> : vector<8xf32>
    %29 = vector.multi_reduction <add>, %28, %cst_13 [1] : vector<8x512xf32> to vector<8xf32>
    %30 = vector.shape_cast %29 : vector<8xf32> to vector<8x1xf32>
    %31 = arith.mulf %30, %30 : vector<8x1xf32>
    %cst_14 = arith.constant 1.000000e+00 : f32
    %32 = vector.broadcast %cst_14 : f32 to vector<8x1xf32>
    %33 = arith.subf %32, %31 : vector<8x1xf32>
    %cst_15 = arith.constant 0.000000e+00 : f32
    %34 = vector.broadcast %cst_15 : f32 to vector<8x1xf32>
    %35 = arith.maximumf %33, %34 : vector<8x1xf32>
    %36 = math.sqrt %35 : vector<8x1xf32>
    %cst_16 = arith.constant 0.87758255 : f32
    %37 = vector.broadcast %cst_16 : f32 to vector<8x1xf32>
    %38 = arith.mulf %30, %37 : vector<8x1xf32>
    %cst_17 = arith.constant 0.47942555 : f32
    %39 = vector.broadcast %cst_17 : f32 to vector<8x1xf32>
    %40 = arith.mulf %36, %39 : vector<8x1xf32>
    %41 = arith.subf %38, %40 : vector<8x1xf32>
    %cst_18 = arith.constant -0.87758255 : f32
    %42 = vector.broadcast %cst_18 : f32 to vector<8x1xf32>
    %43 = arith.subf %30, %42 : vector<8x1xf32>
    %cst_19 = arith.constant 0.000000e+00 : f32
    %44 = vector.broadcast %cst_19 : f32 to vector<8x1xf32>
    %45 = arith.cmpf ole, %43, %44 : vector<8x1xf32>
    %cst_20 = arith.constant 0.239712775 : f32
    %46 = vector.broadcast %cst_20 : f32 to vector<8x1xf32>
    %47 = arith.subf %30, %46 : vector<8x1xf32>
    %48 = arith.select %45, %47, %41 : vector<8x1xi1>, vector<8x1xf32>
    %49 = vector.shape_cast %48 : vector<8x1xf32> to vector<8x1xf32>
    %50 = vector.broadcast %49 : vector<8x1xf32> to vector<8x512xf32>
    %51 = arith.select %26, %50, %15 : vector<8x512xi1>, vector<8x512xf32>
    %cst_21 = arith.constant 6.400000e+01 : f32
    %52 = vector.broadcast %cst_21 : f32 to vector<8x512xf32>
    %53 = arith.mulf %51, %52 : vector<8x512xf32>
    %c0_22 = arith.constant 0 : index
    %c0_23 = arith.constant 0 : index
    %54 = vector.load %arg6[%c0_22, %c0_23] : memref<8x512xf32, #tpu.memory_space<vmem>>, vector<8x512xf32>
    tpu.vector_store %arg6[%c0_22, %c0_23], %53 {strides = array<i32>} : memref<8x512xf32, #tpu.memory_space<vmem>>, vector<8x512xf32>,
    return
  }
  func.func @transform_0(%arg0: i32, %arg1: i32) -> (i32, i32) {
    %c0_i32 = arith.constant 0 : i32
    %c0_i32_0 = arith.constant 0 : i32
    return %arg1, %c0_i32 : i32, i32
  }
  func.func @transform_1(%arg0: i32, %arg1: i32) -> (i32, i32) {
    %c0_i32 = arith.constant 0 : i32
    %c0_i32_0 = arith.constant 0 : i32
    return %arg1, %c0_i32 : i32, i32
  }
  func.func @transform_2(%arg0: i32, %arg1: i32) -> (i32, i32) {
    %c0_i32 = arith.constant 0 : i32
    %c0_i32_0 = arith.constant 0 : i32
    return %arg1, %c0_i32 : i32, i32
  }
  func.func @transform_3(%arg0: i32, %arg1: i32) -> (i32, i32) {
    %c0_i32 = arith.constant 0 : i32
    %c0_i32_0 = arith.constant 0 : i32
    return %c0_i32, %arg0 : i32, i32
  }
  func.func @transform_4(%arg0: i32, %arg1: i32) -> (i32, i32) {
    %c0_i32 = arith.constant 0 : i32
    return %arg1, %arg0 : i32, i32
  }
}

</mosaic_0001>

<bundles_post_ra>
// kernel: tpu_custom_call.1
= control target key start
LH: loop header
LB: loop body
LE: loop exit
PB: predicated region body
PF: predicated region fallthrough
CT: control target
= control target key end

     0   :  { %9 = vsyncpa [#allocation5], 0  ;;  %s1884_s0 = inlined_call_operand.vmem [shape: s32[8,1], index: 0, kind: input, shape index: {}]   ;;  %s1885_s1 = inlined_call_operand.vmem [shape: f32[8,1], index: 1, kind: input, shape index: {}]   ;;  %s1886_s2 = inlined_call_operand.vmem [shape: f32[8,128], index: 2, kind: input, shape index: {}]   ;;  %s1887_s3 = inlined_call_operand.vmem [shape: f32[128,1000], index: 3, kind: input, shape index: {}]   ;;  %s1888_s4 = inlined_call_operand.hbm [shape: f32[8,1000], index: 4, kind: output, shape index: {}]  }
   0x1   :  { %11 = vsyncpa [#allocation5 + $0x1], 0  ;;  %s1212_s15 = smov 0   ;;  %s1214_s16 = smov 0  }
   0x2   :  { %s1216_s17 = smov 0   ;;  %s1218_s18 = smov 0  }
   0x3   :  { %s1220_s19 = smov 0   ;;  %s1222_s20 = smov 0  }
   0x4 LB: > { %s1009_s21 = sadd.s32 4294967295, %s1183_s20   ;;  %s1010_s22 = sadd.s32 4294967294, %s1183_s20   ;;  %s1183_s20 = sphi %s1222_s20, %s17_s20   ;;  %s1179_s19 = sphi %s1220_s19, %s1939_s19   ;;  %s1175_s18 = sphi %s1218_s18, %s1938_s18   ;;  %s1171_s17 = sphi %s1216_s17, %s1937_s17   ;;  %s1167_s16 = sphi %s1214_s16, %s1936_s16   ;;  %s1163_s15 = sphi %s1212_s15, %s1935_s15  }
   0x5   : > { %s29_s23 = sadd.s32 1, %s1179_s19  ;;  %s114_s24 = sadd.s32 1, %s1171_s17 }
   0x6   : > { %p31_p0 = scmp.ge.s32.totalorder %s29_s23, 2  ;;  %p121_p1 = scmp.ne.s32.totalorder %s1171_s17, %s1167_s16 }
   0x7   : > { %p122_p2 = scmp.eq.s32.totalorder %s1183_s20, 0  ;;  %p153_p3 = scmp.eq.s32.totalorder %s1009_s21, 1 }
   0x8   : > { %s1941_s23 = smov (%p31_p0, %s29_s23), 0  ;;  %p158_p6 = scmp.ne.s32.totalorder %s1167_s16, %s1163_s15 }
   0x9   : > { %p123_p4 = por %p122_p2, %p121_p1  ;;  %p1251_p5 = por %p153_p3, %p121_p1 }
   0xa   : > { %s111_s26 = ssub.s32 %s1179_s19, %s1941_s23  ;;  %p159_p8 = scmp.eq.s32.totalorder %s1010_s22, 1 }
   0xb   : > { %p112_p7 = scmp.eq.s32.totalorder %s111_s26, 0  ;;  %p1015_p10 = scmp.ge.s32.totalorder %s1183_s20, 2 }
   0xc   : > { %p1262_p9 = por %p159_p8, %p158_p6 }
   0xd   : > { %s1260_s27 = scalar_select %p112_p7, %s1171_s17, %s114_s24  }
   0xe   : > { %196 = sbr.rel (%p1015_p10) target bundleno = 87 (0x57), region = 28 }
  0x13   : > { %199 = sbr.rel (!%p123_p4) target bundleno = 87 (0x57), region = 32  ;;  %s201_s29 = sand.u32 (%p123_p4), 1, %s1171_s17  }
  0x14   : > { %s1034_s30 = sshll.u32 (%p123_p4), %s1179_s19, 5  ;;  %s1016_s5 = sshll.u32 (%p123_p4), %s201_s29, 9 }
  0x15   : > { %s1274_s8 = scalar_lea.vmem (%p123_p4), %s1887_s3, %s1034_s30  ;;  %s1279_s9 = scalar_lea.vmem (%p123_p4), [#allocation3], %s1016_s5 }
  0x16   : > { %v219_v0 = vld [vmem:[%s1274_s8] sm:$0xff] (%p123_p4)  ;;  %v221_v1 = vld [vmem:[%s1274_s8 + $0x8] sm:$0xff] (%p123_p4)  ;;  %v223_v2 = vld [vmem:[%s1274_s8 + $0x10] sm:$0xff] (%p123_p4) }
  0x17   : > { %220 = vst [vmem:[%s1279_s9] sm:$0xff] (%p123_p4), %v219_v0  ;;  %v225_v3 = vld [vmem:[%s1274_s8 + $0x18] sm:$0xff] (%p123_p4)  ;;  %v227_v4 = vld [vmem:[%s1274_s8 + $0x40] sm:$0xff] (%p123_p4)  ;;  %v229_v5 = vld [vmem:[%s1274_s8 + $0x48] sm:$0xff] (%p123_p4) }
  0x18   : > { %222 = vst [vmem:[%s1279_s9 + $0x8] sm:$0xff] %v221_v1  ;;  %v231_v6 = vld [vmem:[%s1274_s8 + $0x50] sm:$0xff]  ;;  %v233_v7 = vld [vmem:[%s1274_s8 + $0x58] sm:$0xff]  ;;  %v235_v8 = vld [vmem:[%s1274_s8 + $0x80] sm:$0xff] }
  0x19   : > { %224 = vst [vmem:[%s1279_s9 + $0x10] sm:$0xff] %v223_v2  ;;  %v237_v9 = vld [vmem:[%s1274_s8 + $0x88] sm:$0xff]  ;;  %v239_v10 = vld [vmem:[%s1274_s8 + $0x90] sm:$0xff]  ;;  %v241_v11 = vld [vmem:[%s1274_s8 + $0x98] sm:$0xff] }
  0x1a   : > { %226 = vst [vmem:[%s1279_s9 + $0x18] sm:$0xff] %v225_v3  ;;  %v243_v12 = vld [vmem:[%s1274_s8 + $0xc0] sm:$0xff]  ;;  %v245_v13 = vld [vmem:[%s1274_s8 + $0xc8] sm:$0xff]  ;;  %v247_v14 = vld [vmem:[%s1274_s8 + $0xd0] sm:$0xff] }
  0x1b   : > { %228 = vst [vmem:[%s1279_s9 + $0x20] sm:$0xff] %v227_v4  ;;  %v249_v15 = vld [vmem:[%s1274_s8 + $0xd8] sm:$0xff]  ;;  %v251_v16 = vld [vmem:[%s1274_s8 + $0x100] sm:$0xff]  ;;  %v253_v17 = vld [vmem:[%s1274_s8 + $0x108] sm:$0xff] }
  0x1c   : > { %230 = vst [vmem:[%s1279_s9 + $0x28] sm:$0xff] %v229_v5  ;;  %v255_v18 = vld [vmem:[%s1274_s8 + $0x110] sm:$0xff]  ;;  %v257_v19 = vld [vmem:[%s1274_s8 + $0x118] sm:$0xff]  ;;  %v259_v20 = vld [vmem:[%s1274_s8 + $0x140] sm:$0xff] }
  0x1d   : > { %232 = vst [vmem:[%s1279_s9 + $0x30] sm:$0xff] %v231_v6  ;;  %v261_v21 = vld [vmem:[%s1274_s8 + $0x148] sm:$0xff]  ;;  %v263_v22 = vld [vmem:[%s1274_s8 + $0x150] sm:$0xff]  ;;  %v265_v23 = vld [vmem:[%s1274_s8 + $0x158] sm:$0xff] }
  0x1e   : > { %234 = vst [vmem:[%s1279_s9 + $0x38] sm:$0xff] %v233_v7  ;;  %v267_v24 = vld [vmem:[%s1274_s8 + $0x180] sm:$0xff]  ;;  %v269_v25 = vld [vmem:[%s1274_s8 + $0x188] sm:$0xff]  ;;  %v271_v26 = vld [vmem:[%s1274_s8 + $0x190] sm:$0xff] }
  0x1f   : > { %236 = vst [vmem:[%s1279_s9 + $0x40] sm:$0xff] %v235_v8  ;;  %v273_v27 = vld [vmem:[%s1274_s8 + $0x198] sm:$0xff]  ;;  %v275_v28 = vld [vmem:[%s1274_s8 + $0x1c0] sm:$0xff]  ;;  %v277_v29 = vld [vmem:[%s1274_s8 + $0x1c8] sm:$0xff] }
  0x20   : > { %238 = vst [vmem:[%s1279_s9 + $0x48] sm:$0xff] %v237_v9  ;;  %v279_v30 = vld [vmem:[%s1274_s8 + $0x1d0] sm:$0xff]  ;;  %v281_v31 = vld [vmem:[%s1274_s8 + $0x1d8] sm:$0xff]  ;;  %v283_v32 = vld [vmem:[%s1274_s8 + $0x200] sm:$0xff] }
  0x21   : > { %240 = vst [vmem:[%s1279_s9 + $0x50] sm:$0xff] %v239_v10  ;;  %v285_v33 = vld [vmem:[%s1274_s8 + $0x208] sm:$0xff]  ;;  %v287_v34 = vld [vmem:[%s1274_s8 + $0x210] sm:$0xff]  ;;  %v289_v35 = vld [vmem:[%s1274_s8 + $0x218] sm:$0xff] }
  0x22   : > { %242 = vst [vmem:[%s1279_s9 + $0x58] sm:$0xff] %v241_v11  ;;  %v291_v36 = vld [vmem:[%s1274_s8 + $0x240] sm:$0xff]  ;;  %v293_v37 = vld [vmem:[%s1274_s8 + $0x248] sm:$0xff]  ;;  %v295_v38 = vld [vmem:[%s1274_s8 + $0x250] sm:$0xff] }
  0x23   : > { %244 = vst [vmem:[%s1279_s9 + $0x60] sm:$0xff] %v243_v12  ;;  %v297_v39 = vld [vmem:[%s1274_s8 + $0x258] sm:$0xff]  ;;  %v299_v40 = vld [vmem:[%s1274_s8 + $0x280] sm:$0xff]  ;;  %v301_v41 = vld [vmem:[%s1274_s8 + $0x288] sm:$0xff] }
  0x24   : > { %246 = vst [vmem:[%s1279_s9 + $0x68] sm:$0xff] %v245_v13  ;;  %v303_v42 = vld [vmem:[%s1274_s8 + $0x290] sm:$0xff]  ;;  %v305_v43 = vld [vmem:[%s1274_s8 + $0x298] sm:$0xff]  ;;  %v307_v44 = vld [vmem:[%s1274_s8 + $0x2c0] sm:$0xff] }
  0x25   : > { %248 = vst [vmem:[%s1279_s9 + $0x70] sm:$0xff] %v247_v14  ;;  %v309_v45 = vld [vmem:[%s1274_s8 + $0x2c8] sm:$0xff]  ;;  %v311_v46 = vld [vmem:[%s1274_s8 + $0x2d0] sm:$0xff]  ;;  %v313_v47 = vld [vmem:[%s1274_s8 + $0x2d8] sm:$0xff] }
  0x26   : > { %250 = vst [vmem:[%s1279_s9 + $0x78] sm:$0xff] %v249_v15  ;;  %v315_v48 = vld [vmem:[%s1274_s8 + $0x300] sm:$0xff]  ;;  %v317_v49 = vld [vmem:[%s1274_s8 + $0x308] sm:$0xff]  ;;  %v319_v50 = vld [vmem:[%s1274_s8 + $0x310] sm:$0xff] }
  0x27   : > { %252 = vst [vmem:[%s1279_s9 + $0x80] sm:$0xff] %v251_v16  ;;  %v321_v51 = vld [vmem:[%s1274_s8 + $0x318] sm:$0xff]  ;;  %v323_v52 = vld [vmem:[%s1274_s8 + $0x340] sm:$0xff]  ;;  %v325_v53 = vld [vmem:[%s1274_s8 + $0x348] sm:$0xff] }
  0x28   : > { %254 = vst [vmem:[%s1279_s9 + $0x88] sm:$0xff] %v253_v17  ;;  %v327_v54 = vld [vmem:[%s1274_s8 + $0x350] sm:$0xff]  ;;  %v329_v55 = vld [vmem:[%s1274_s8 + $0x358] sm:$0xff]  ;;  %v331_v56 = vld [vmem:[%s1274_s8 + $0x380] sm:$0xff] }
  0x29   : > { %256 = vst [vmem:[%s1279_s9 + $0x90] sm:$0xff] %v255_v18  ;;  %v333_v57 = vld [vmem:[%s1274_s8 + $0x388] sm:$0xff]  ;;  %v335_v58 = vld [vmem:[%s1274_s8 + $0x390] sm:$0xff]  ;;  %v337_v59 = vld [vmem:[%s1274_s8 + $0x398] sm:$0xff] }
  0x2a   : > { %258 = vst [vmem:[%s1279_s9 + $0x98] sm:$0xff] %v257_v19  ;;  %v339_v60 = vld [vmem:[%s1274_s8 + $0x3c0] sm:$0xff]  ;;  %v341_v61 = vld [vmem:[%s1274_s8 + $0x3c8] sm:$0xff]  ;;  %v343_v62 = vld [vmem:[%s1274_s8 + $0x3d0] sm:$0xff] }
  0x2b   : > { %260 = vst [vmem:[%s1279_s9 + $0xa0] sm:$0xff] %v259_v20  ;;  %v345_v63 = vld [vmem:[%s1274_s8 + $0x3d8] sm:$0xff] }
  0x2c   : > { %262 = vst [vmem:[%s1279_s9 + $0xa8] sm:$0xff] %v261_v21 }
  0x2d   : > { %264 = vst [vmem:[%s1279_s9 + $0xb0] sm:$0xff] %v263_v22 }
  0x2e   : > { %266 = vst [vmem:[%s1279_s9 + $0xb8] sm:$0xff] %v265_v23 }
  0x2f   : > { %268 = vst [vmem:[%s1279_s9 + $0xc0] sm:$0xff] %v267_v24 }
  0x30   : > { %270 = vst [vmem:[%s1279_s9 + $0xc8] sm:$0xff] %v269_v25 }
  0x31   : > { %272 = vst [vmem:[%s1279_s9 + $0xd0] sm:$0xff] %v271_v26 }
  0x32   : > { %274 = vst [vmem:[%s1279_s9 + $0xd8] sm:$0xff] %v273_v27 }
  0x33   : > { %276 = vst [vmem:[%s1279_s9 + $0xe0] sm:$0xff] %v275_v28 }
  0x34   : > { %278 = vst [vmem:[%s1279_s9 + $0xe8] sm:$0xff] %v277_v29 }
  0x35   : > { %280 = vst [vmem:[%s1279_s9 + $0xf0] sm:$0xff] %v279_v30 }
  0x36   : > { %282 = vst [vmem:[%s1279_s9 + $0xf8] sm:$0xff] %v281_v31 }
  0x37   : > { %284 = vst [vmem:[%s1279_s9 + $0x100] sm:$0xff] %v283_v32 }
  0x38   : > { %286 = vst [vmem:[%s1279_s9 + $0x108] sm:$0xff] %v285_v33 }
  0x39   : > { %288 = vst [vmem:[%s1279_s9 + $0x110] sm:$0xff] %v287_v34 }
  0x3a   : > { %290 = vst [vmem:[%s1279_s9 + $0x118] sm:$0xff] %v289_v35 }
  0x3b   : > { %292 = vst [vmem:[%s1279_s9 + $0x120] sm:$0xff] %v291_v36 }
  0x3c   : > { %294 = vst [vmem:[%s1279_s9 + $0x128] sm:$0xff] %v293_v37 }
  0x3d   : > { %296 = vst [vmem:[%s1279_s9 + $0x130] sm:$0xff] %v295_v38 }
  0x3e   : > { %298 = vst [vmem:[%s1279_s9 + $0x138] sm:$0xff] %v297_v39 }
  0x3f   : > { %300 = vst [vmem:[%s1279_s9 + $0x140] sm:$0xff] %v299_v40 }
  0x40   : > { %302 = vst [vmem:[%s1279_s9 + $0x148] sm:$0xff] %v301_v41 }
  0x41   : > { %304 = vst [vmem:[%s1279_s9 + $0x150] sm:$0xff] %v303_v42 }
  0x42   : > { %306 = vst [vmem:[%s1279_s9 + $0x158] sm:$0xff] %v305_v43 }
  0x43   : > { %308 = vst [vmem:[%s1279_s9 + $0x160] sm:$0xff] %v307_v44 }
  0x44   : > { %310 = vst [vmem:[%s1279_s9 + $0x168] sm:$0xff] %v309_v45 }
  0x45   : > { %312 = vst [vmem:[%s1279_s9 + $0x170] sm:$0xff] %v311_v46 }
  0x46   : > { %314 = vst [vmem:[%s1279_s9 + $0x178] sm:$0xff] %v313_v47 }
  0x47   : > { %316 = vst [vmem:[%s1279_s9 + $0x180] sm:$0xff] %v315_v48 }
  0x48   : > { %318 = vst [vmem:[%s1279_s9 + $0x188] sm:$0xff] %v317_v49 }
  0x49   : > { %320 = vst [vmem:[%s1279_s9 + $0x190] sm:$0xff] %v319_v50 }
  0x4a   : > { %322 = vst [vmem:[%s1279_s9 + $0x198] sm:$0xff] %v321_v51 }
  0x4b   : > { %324 = vst [vmem:[%s1279_s9 + $0x1a0] sm:$0xff] %v323_v52 }
  0x4c   : > { %326 = vst [vmem:[%s1279_s9 + $0x1a8] sm:$0xff] %v325_v53 }
  0x4d   : > { %328 = vst [vmem:[%s1279_s9 + $0x1b0] sm:$0xff] %v327_v54 }
  0x4e   : > { %330 = vst [vmem:[%s1279_s9 + $0x1b8] sm:$0xff] %v329_v55 }
  0x4f   : > { %332 = vst [vmem:[%s1279_s9 + $0x1c0] sm:$0xff] %v331_v56 }
  0x50   : > { %334 = vst [vmem:[%s1279_s9 + $0x1c8] sm:$0xff] %v333_v57 }
  0x51   : > { %336 = vst [vmem:[%s1279_s9 + $0x1d0] sm:$0xff] %v335_v58 }
  0x52   : > { %338 = vst [vmem:[%s1279_s9 + $0x1d8] sm:$0xff] %v337_v59 }
  0x53   : > { %340 = vst [vmem:[%s1279_s9 + $0x1e0] sm:$0xff] %v339_v60 }
  0x54   : > { %342 = vst [vmem:[%s1279_s9 + $0x1e8] sm:$0xff] %v341_v61 }
  0x55   : > { %344 = vst [vmem:[%s1279_s9 + $0x1f0] sm:$0xff] %v343_v62 }
  0x56   : > { %346 = vst [vmem:[%s1279_s9 + $0x1f8] sm:$0xff] %v345_v63 }
  0x57 PF: > { %p1019_p11 = scmp.ge.s32.totalorder %s1183_s20, 1  ;;  %p351_p12 = scmp.lt.s32.totalorder %s1183_s20, 3 }
  0x59   : > { %p352_p13 = pnand %p1019_p11, %p351_p12 }
  0x5b   : > { %355 = sbr.rel (%p352_p13) target bundleno = 470 (0x1d6), region = 55 }
  0x60   : > { %s1409_s10 = sand.u32 1, %s1167_s16   ;;  %vm672_vm12 = vcmask 1040384   ;;  %vm674_vm13 = vcmask 1042434   ;;  %vm676_vm15 = vcmask 1041408   ;;  %s1026_s29 = sshll.u32 %s1175_s18, 9 }
  0x61   : > { %s1020_s11 = sshll.u32 %s1409_s10, 9  ;;  %s1021_s30 = sshll.u32 %s1409_s10, 5 }
  0x62   : > { %s1412_s12 = scalar_lea.vmem [#allocation3], %s1020_s11  ;;  %s1035_s5 = sshll.u32 %s1175_s18, 5 }
  0x63   : > { %v1415_v0 = vld [vmem:[%s1412_s12 + $0x1e0] sm:$0xff]  ;;  %v1418_v1 = vld [vmem:[%s1412_s12 + $0x1e8] sm:$0xff]  ;;  %v1421_v2 = vld [vmem:[%s1412_s12 + $0x1f0] sm:$0xff]  ;;  %s883_s8 = scalar_lea.hbm %s1888_s4, %s1035_s5  ;;  %s394_s18 = scalar_lea.vmem [#allocation4], %s1021_s30 }
  0x64   : > { %v537_v3 = vmul.f32 %v1415_v0, %v1415_v0  ;;  %v538_v4 = vmul.f32 %v1418_v1, %v1418_v1  ;;  %v539_v5 = vmul.f32 %v1421_v2, %v1421_v2  ;;  %v1430_v6 = vld [vmem:[%s1412_s12 + $0x1f8] sm:$0xff]  ;;  %v1433_v7 = vld [vmem:[%s1412_s12 + $0x1c0] sm:$0xff]  ;;  %v1436_v8 = vld [vmem:[%s1412_s12 + $0x1c8] sm:$0xff]  ;;  %s885_s9 = sshll.u32 %s394_s18, 4  ;;  %s887_s11 = sshll.u32 %s883_s8, 4  ;;  %s886_s9 = int_to_ptr.vmem [resolvable:$true] %s885_s9  ;;  %s888_s11 = int_to_ptr.hbm [resolvable:$true] %s887_s11 }
  0x65   : > { %v540_v9 = vmul.f32 %v1430_v6, %v1430_v6  ;;  %v533_v10 = vmul.f32 %v1433_v7, %v1433_v7  ;;  %v534_v11 = vmul.f32 %v1436_v8, %v1436_v8  ;;  %v1445_v12 = vld [vmem:[%s1412_s12 + $0x1d0] sm:$0xff]  ;;  %v1448_v13 = vld [vmem:[%s1412_s12 + $0x1d8] sm:$0xff]  ;;  %v1451_v14 = vld [vmem:[%s1412_s12 + $0x1a0] sm:$0xff]  ;;  %s1119_s13 = sshra.s32 %s888_s11, 4  ;;  %s1125_s24 = scalar_lea.hbm %s1888_s4, 64  ;;  %s1120_s13 = int_to_ptr.hbm [resolvable:$true] %s1119_s13 }
  0x66   : > { %541 = vmatpush.msra.mxu0 %v537_v3  ;;  %561 = vmatpush.msra.mxu1 %v538_v4  ;;  %v535_v15 = vmul.f32 %v1445_v12, %v1445_v12  ;;  %v536_v16 = vmul.f32 %v1448_v13, %v1448_v13  ;;  %v529_v17 = vmul.f32 %v1451_v14, %v1451_v14  ;;  %v1460_v18 = vld [vmem:[%s1412_s12 + $0x1a8] sm:$0xff]  ;;  %v1463_v19 = vld [vmem:[%s1412_s12 + $0x1b0] sm:$0xff]  ;;  %v1466_v20 = vld [vmem:[%s1412_s12 + $0x1b8] sm:$0xff]  ;;  %s1121_s14 = scalar_lea.hbm %s1120_s13, 32  ;;  %p1126_p3 = scmp.lt.s32.totalorder %s1120_s13, %s1888_s4 }
  0x67   : > { %581 = vmatpush.msra.mxu2 %v539_v5  ;;  %601 = vmatpush.msra.mxu3 %v540_v9  ;;  %v530_v21 = vmul.f32 %v1460_v18, %v1460_v18  ;;  %v531_v22 = vmul.f32 %v1463_v19, %v1463_v19  ;;  %v532_v23 = vmul.f32 %v1466_v20, %v1466_v20  ;;  %v1475_v24 = vld [vmem:[%s1412_s12 + $0x180] sm:$0xff]  ;;  %v1478_v25 = vld [vmem:[%s1412_s12 + $0x188] sm:$0xff]  ;;  %v1481_v26 = vld [vmem:[%s1412_s12 + $0x190] sm:$0xff]  ;;  %p1122_p0 = scmp.ne.s32.totalorder %s1120_s13, %s1121_s14  ;;  %p1127_p4 = scmp.lt.s32.totalorder %s1125_s24, %s1121_s14 }
  0x68   : > { %542 = vmatpush.msra.mxu0 %v533_v10  ;;  %562 = vmatpush.msra.mxu1 %v534_v11  ;;  %v525_v27 = vmul.f32 %v1475_v24, %v1475_v24  ;;  %v526_v28 = vmul.f32 %v1478_v25, %v1478_v25  ;;  %v1488_v29 = vld [vmem:[%s1412_s12 + $0x198] sm:$0xff]  ;;  %v1491_v30 = vld [vmem:[%s1412_s12 + $0x160] sm:$0xff]  ;;  %v1494_v31 = vld [vmem:[%s1412_s12 + $0x168] sm:$0xff]  ;;  %v527_v32 = vmul.f32 %v1481_v26, %v1481_v26 }
  0x69   : > { %582 = vmatpush.msra.mxu2 %v535_v15  ;;  %602 = vmatpush.msra.mxu3 %v536_v16  ;;  %v528_v33 = vmul.f32 %v1488_v29, %v1488_v29  ;;  %v1501_v34 = vld [vmem:[%s1412_s12 + $0x170] sm:$0xff]  ;;  %v1504_v35 = vld [vmem:[%s1412_s12 + $0x178] sm:$0xff]  ;;  %v1507_v36 = vld [vmem:[%s1412_s12 + $0x140] sm:$0xff]  ;;  %v521_v37 = vmul.f32 %v1491_v30, %v1491_v30  ;;  %v522_v38 = vmul.f32 %v1494_v31, %v1494_v31  ;;  %p1123_p1 = pnand %p1122_p0, %p1251_p5  ;;  %p1128_p6 = por %p1127_p4, %p1126_p3 }
  0x6a   : > { %543 = vmatpush.msra.mxu0 %v529_v17  ;;  %563 = vmatpush.msra.mxu1 %v530_v21  ;;  %v1514_v39 = vld [vmem:[%s1412_s12 + $0x148] sm:$0xff]  ;;  %v1517_v40 = vld [vmem:[%s1412_s12 + $0x150] sm:$0xff]  ;;  %v1520_v41 = vld [vmem:[%s1412_s12 + $0x158] sm:$0xff]  ;;  %v523_v42 = vmul.f32 %v1501_v34, %v1501_v34  ;;  %v524_v43 = vmul.f32 %v1504_v35, %v1504_v35  ;;  %v517_v46 = vmul.f32 %v1507_v36, %v1507_v36 }
  0x6b   : > { %583 = vmatpush.msra.mxu2 %v531_v22  ;;  %603 = vmatpush.msra.mxu3 %v532_v23  ;;  %v1527_v44 = vld [vmem:[%s1412_s12 + $0x120] sm:$0xff]  ;;  %v1530_v45 = vld [vmem:[%s1412_s12 + $0x128] sm:$0xff]  ;;  %v518_v47 = vmul.f32 %v1514_v39, %v1514_v39  ;;  %v1537_v48 = vld [vmem:[%s1412_s12 + $0x130] sm:$0xff]  ;;  %v519_v50 = vmul.f32 %v1517_v40, %v1517_v40  ;;  %v520_v51 = vmul.f32 %v1520_v41, %v1520_v41  ;;  %p1124_p2 = pneg %p1123_p1 }
  0x6c   : > { %544 = vmatpush.msra.mxu0 %v525_v27  ;;  %564 = vmatpush.msra.mxu1 %v526_v28  ;;  %v1540_v49 = vld [vmem:[%s1412_s12 + $0x138] sm:$0xff]  ;;  %v1547_v52 = vld [vmem:[%s1412_s12 + $0x100] sm:$0xff]  ;;  %v1550_v53 = vld [vmem:[%s1412_s12 + $0x108] sm:$0xff]  ;;  %v513_v54 = vmul.f32 %v1527_v44, %v1527_v44  ;;  %v514_v55 = vmul.f32 %v1530_v45, %v1530_v45  ;;  %v515_v58 = vmul.f32 %v1537_v48, %v1537_v48 }
  0x6d   : > { %584 = vmatpush.msra.mxu2 %v527_v32  ;;  %604 = vmatpush.msra.mxu3 %v528_v33  ;;  %v1557_v56 = vld [vmem:[%s1412_s12 + $0x110] sm:$0xff]  ;;  %v1560_v57 = vld [vmem:[%s1412_s12 + $0x118] sm:$0xff]  ;;  %v516_v59 = vmul.f32 %v1540_v49, %v1540_v49  ;;  %v1567_v60 = vld [vmem:[%s1412_s12 + $0xe0] sm:$0xff]  ;;  %v509_v62 = vmul.f32 %v1547_v52, %v1547_v52  ;;  %v510_v63 = vmul.f32 %v1550_v53, %v1550_v53  ;;  %p1129_p7 = pnand %p1128_p6, %p1124_p2 }
  0x6e   : > { %545 = vmatpush.msra.mxu0 %v521_v37  ;;  %565 = vmatpush.msra.mxu1 %v522_v38  ;;  %v1570_v61 = vld [vmem:[%s1412_s12 + $0xe8] sm:$0xff]  ;;  %v1577_v3 = vld [vmem:[%s1412_s12 + $0xf0] sm:$0xff]  ;;  %v1580_v4 = vld [vmem:[%s1412_s12 + $0xf8] sm:$0xff]  ;;  %v511_v5 = vmul.f32 %v1557_v56, %v1557_v56  ;;  %v512_v9 = vmul.f32 %v1560_v57, %v1560_v57  ;;  %v505_v15 = vmul.f32 %v1567_v60, %v1567_v60 }
  0x6f   : > { %585 = vmatpush.msra.mxu2 %v523_v42  ;;  %605 = vmatpush.msra.mxu3 %v524_v43  ;;  %v1587_v10 = vld [vmem:[%s1412_s12 + $0xc0] sm:$0xff]  ;;  %v1590_v11 = vld [vmem:[%s1412_s12 + $0xc8] sm:$0xff]  ;;  %v506_v16 = vmul.f32 %v1570_v61, %v1570_v61  ;;  %v1597_v17 = vld [vmem:[%s1412_s12 + $0xd0] sm:$0xff]  ;;  %v507_v22 = vmul.f32 %v1577_v3, %v1577_v3  ;;  %v508_v23 = vmul.f32 %v1580_v4, %v1580_v4 }
  0x70   : > { %546 = vmatpush.msra.mxu0 %v517_v46  ;;  %566 = vmatpush.msra.mxu1 %v518_v47  ;;  %v1600_v21 = vld [vmem:[%s1412_s12 + $0xd8] sm:$0xff]  ;;  %v1607_v27 = vld [vmem:[%s1412_s12 + $0xa0] sm:$0xff]  ;;  %v1610_v28 = vld [vmem:[%s1412_s12 + $0xa8] sm:$0xff]  ;;  %v501_v32 = vmul.f32 %v1587_v10, %v1587_v10  ;;  %v502_v33 = vmul.f32 %v1590_v11, %v1590_v11  ;;  %v503_v42 = vmul.f32 %v1597_v17, %v1597_v17 }
  0x71   : > { %586 = vmatpush.msra.mxu2 %v519_v50  ;;  %606 = vmatpush.msra.mxu3 %v520_v51  ;;  %v1617_v37 = vld [vmem:[%s1412_s12 + $0xb0] sm:$0xff]  ;;  %v1620_v38 = vld [vmem:[%s1412_s12 + $0xb8] sm:$0xff]  ;;  %v504_v43 = vmul.f32 %v1600_v21, %v1600_v21  ;;  %v1627_v46 = vld [vmem:[%s1412_s12 + $0x80] sm:$0xff]  ;;  %v497_v50 = vmul.f32 %v1607_v27, %v1607_v27  ;;  %v498_v51 = vmul.f32 %v1610_v28, %v1610_v28 }
  0x72   : > { %547 = vmatpush.msra.mxu0 %v513_v54  ;;  %567 = vmatpush.msra.mxu1 %v514_v55  ;;  %1903 = vst [vmem:[#allocation7_spill] sm:$0xff] %v1627_v46  ;;  %v1630_v47 = vld [vmem:[%s1412_s12 + $0x88] sm:$0xff]  ;;  %v1637_v54 = vld [vmem:[%s1412_s12 + $0x90] sm:$0xff]  ;;  %v1640_v55 = vld [vmem:[%s1412_s12 + $0x98] sm:$0xff] }
  0x73   : > { %587 = vmatpush.msra.mxu2 %v515_v58  ;;  %607 = vmatpush.msra.mxu3 %v516_v59  ;;  %1904 = vst [vmem:[#allocation8_spill] sm:$0xff] %v1630_v47  ;;  %v499_v58 = vmul.f32 %v1617_v37, %v1617_v37  ;;  %v500_v59 = vmul.f32 %v1620_v38, %v1620_v38 }
  0x74   : > { %548 = vmatpush.msra.mxu0 %v509_v62  ;;  %568 = vmatpush.msra.mxu1 %v510_v63  ;;  %1905 = vst [vmem:[#allocation9_spill] sm:$0xff] %v1637_v54  ;;  %v1647_v62 = vld [vmem:[%s1412_s12 + $0x60] sm:$0xff]  ;;  %v1650_v63 = vld [vmem:[%s1412_s12 + $0x68] sm:$0xff] }
  0x75   : > { %588 = vmatpush.msra.mxu2 %v511_v5  ;;  %608 = vmatpush.msra.mxu3 %v512_v9  ;;  %1906 = vst [vmem:[#allocation10_spill] sm:$0xff] %v1640_v55  ;;  %v493_v5 = vmul.f32 %v1627_v46, %v1627_v46  ;;  %v494_v9 = vmul.f32 %v1630_v47, %v1630_v47  ;;  %v1677_v47 = vld [vmem:[%s1412_s12 + $0x50] sm:$0xff]  ;;  %v1680_v46 = vld [vmem:[%s1412_s12 + $0x58] sm:$0xff] }
  0x76   : > { %549 = vmatpush.msra.mxu0 %v505_v15  ;;  %569 = vmatpush.msra.mxu1 %v506_v16  ;;  %1907 = vst [vmem:[#allocation11_spill] sm:$0xff] %v1647_v62  ;;  %v1657_v15 = vld [vmem:[%s1412_s12 + $0x70] sm:$0xff]  ;;  %v1660_v16 = vld [vmem:[%s1412_s12 + $0x78] sm:$0xff] }
  0x77   : > { %589 = vmatpush.msra.mxu2 %v507_v22  ;;  %609 = vmatpush.msra.mxu3 %v508_v23  ;;  %1908 = vst [vmem:[#allocation12_spill] sm:$0xff] %v1650_v63  ;;  %v495_v22 = vmul.f32 %v1637_v54, %v1637_v54  ;;  %v496_v23 = vmul.f32 %v1640_v55, %v1640_v55  ;;  %v1687_v55 = vld [vmem:[%s1412_s12 + $0x20] sm:$0xff]  ;;  %v1710_v54 = vld [vmem:[%s1412_s12 + $0x8] sm:$0xff] }
  0x78   : > { %550 = vmatpush.msra.mxu0 %v501_v32  ;;  %570 = vmatpush.msra.mxu1 %v502_v33  ;;  %1909 = vst [vmem:[#allocation13_spill] sm:$0xff] %v1657_v15  ;;  %v1667_v32 = vld [vmem:[%s1412_s12 + $0x40] sm:$0xff]  ;;  %v1670_v33 = vld [vmem:[%s1412_s12 + $0x48] sm:$0xff] }
  0x79   : > { %1910 = vst [vmem:[#allocation14_spill] sm:$0xff] %v1660_v16  ;;  %590 = vmatpush.msra.mxu2 %v503_v42  ;;  %610 = vmatpush.msra.mxu3 %v504_v43  ;;  %v489_v42 = vmul.f32 %v1647_v62, %v1647_v62  ;;  %v490_v43 = vmul.f32 %v1650_v63, %v1650_v63  ;;  %v1690_v62 = vld [vmem:[%s1412_s12 + $0x28] sm:$0xff]  ;;  %v1697_v63 = vld [vmem:[%s1412_s12 + $0x30] sm:$0xff] }
  0x7a   : > { %1911 = vst [vmem:[#allocation15_spill] sm:$0xff] %v1667_v32  ;;  %551 = vmatpush.msra.mxu0 %v497_v50  ;;  %571 = vmatpush.msra.mxu1 %v498_v51  ;;  %v491_v50 = vmul.f32 %v1657_v15, %v1657_v15  ;;  %v492_v51 = vmul.f32 %v1660_v16, %v1660_v16  ;;  %v1700_v15 = vld [vmem:[%s1412_s12 + $0x38] sm:$0xff] }
  0x7b   : > { %1912 = vst [vmem:[#allocation16_spill] sm:$0xff] %v1670_v33  ;;  %591 = vmatpush.msra.mxu2 %v499_v58  ;;  %611 = vmatpush.msra.mxu3 %v500_v59  ;;  %v485_v58 = vmul.f32 %v1667_v32, %v1667_v32  ;;  %v486_v59 = vmul.f32 %v1670_v33, %v1670_v33 }
  0x7c   : > { %1913 = vst [vmem:[#allocation17_spill] sm:$0xff] %v1677_v47  ;;  %552 = vmatpush.msra.mxu0 %v493_v5  ;;  %572 = vmatpush.msra.mxu1 %v494_v9  ;;  %v487_v16 = vmul.f32 %v1677_v47, %v1677_v47  ;;  %v488_v5 = vmul.f32 %v1680_v46, %v1680_v46  ;;  %v1707_v9 = vld [vmem:[%s1412_s12] sm:$0xff] }
  0x7d   : > { %1914 = vst [vmem:[#allocation18_spill] sm:$0xff] %v1680_v46  ;;  %592 = vmatpush.msra.mxu2 %v495_v22  ;;  %612 = vmatpush.msra.mxu3 %v496_v23  ;;  %v481_v33 = vmul.f32 %v1687_v55, %v1687_v55  ;;  %v482_v32 = vmul.f32 %v1690_v62, %v1690_v62  ;;  %v1717_v22 = vld [vmem:[%s1412_s12 + $0x10] sm:$0xff]  ;;  %v1720_v23 = vld [vmem:[%s1412_s12 + $0x18] sm:$0xff]  ;;  %s870_s12 = scalar_lea.sflag [#allocation5], %s1409_s10 }
  0x7e   : > { %553 = vmatpush.msra.mxu0 %v489_v42  ;;  %573 = vmatpush.msra.mxu1 %v490_v43  ;;  %v483_v46 = vmul.f32 %v1697_v63, %v1697_v63  ;;  %v484_v47 = vmul.f32 %v1700_v15, %v1700_v15  ;;  %v477_v42 = vmul.f32 %v1707_v9, %v1707_v9 }
  0x7f   : > { %593 = vmatpush.msra.mxu2 %v491_v50  ;;  %613 = vmatpush.msra.mxu3 %v492_v51  ;;  %v478_v43 = vmul.f32 %v1710_v54, %v1710_v54  ;;  %v479_v50 = vmul.f32 %v1717_v22, %v1717_v22  ;;  %v480_v51 = vmul.f32 %v1720_v23, %v1720_v23 }
  0x80   : > { %554 = vmatpush.msra.mxu0 %v485_v58  ;;  %574 = vmatpush.msra.mxu1 %v486_v59  ;;  %v1185_v58 = vmov 1.0  }
  0x81   : > { %594 = vmatpush.msra.mxu2 %v487_v16  ;;  %614 = vmatpush.msra.mxu3 %v488_v5 }
  0x82   : > { %555 = vmatpush.msra.mxu0 %v481_v33  ;;  %575 = vmatpush.msra.mxu1 %v482_v32 }
  0x83   : > { %595 = vmatpush.msra.mxu2 %v483_v46  ;;  %615 = vmatpush.msra.mxu3 %v484_v47 }
  0x84   : > { %556 = vmatpush.msra.mxu0 %v477_v42  ;;  %576 = vmatpush.msra.mxu1 %v478_v43 }
  0x85   : > { %596 = vmatpush.msra.mxu2 %v479_v50  ;;  %616 = vmatpush.msra.mxu3 %v480_v51 }
  0x86   : > { %557 = vmatmul.f32.vlgmr.msra.gmra.mxu0 %v1185_v58  ;;  %577 = vmatmul.f32.vlgmr.msra.gmra.mxu1 %v1185_v58 }
  0x87   : > { %597 = vmatmul.f32.vlgmr.msra.gmra.mxu2 %v1185_v58  ;;  %617 = vmatmul.f32.vlgmr.msra.gmra.mxu3 %v1185_v58  ;;  %v804_v58 = vstv %s1026_s29 }
  0x88   : > { %726 = vmatpush.msrb.mxu2 %v1421_v2  ;;  %746 = vmatpush.msrb.mxu3 %v1430_v6  ;;  %v1917_v2 = vld [vmem:[#allocation7_spill] sm:$0xff]  ;;  %v1918_v6 = vld [vmem:[#allocation8_spill] sm:$0xff] }
  0x89   : > { %686 = vmatpush.msrb.mxu0 %v1415_v0  ;;  %706 = vmatpush.msrb.mxu1 %v1418_v1  ;;  %v1915_v0 = vld [vmem:[#allocation9_spill] sm:$0xff]  ;;  %v1916_v1 = vld [vmem:[#allocation10_spill] sm:$0xff] }
  0x8a   : > { %727 = vmatpush.msrb.mxu2 %v1445_v12  ;;  %747 = vmatpush.msrb.mxu3 %v1448_v13  ;;  %v1921_v12 = vld [vmem:[#allocation11_spill] sm:$0xff]  ;;  %v1922_v13 = vld [vmem:[#allocation12_spill] sm:$0xff] }
  0x8b   : > { %687 = vmatpush.msrb.mxu0 %v1433_v7  ;;  %707 = vmatpush.msrb.mxu1 %v1436_v8  ;;  %v1919_v7 = vld [vmem:[#allocation13_spill] sm:$0xff]  ;;  %v1920_v8 = vld [vmem:[#allocation14_spill] sm:$0xff] }
  0x8c   : > { %728 = vmatpush.msrb.mxu2 %v1463_v19  ;;  %748 = vmatpush.msrb.mxu3 %v1466_v20  ;;  %v797_v19 = vld [vmem:[%s1884_s0] sm:$0xff] }
  0x8d   : > { %688 = vmatpush.msrb.mxu0 %v1451_v14  ;;  %708 = vmatpush.msrb.mxu1 %v1460_v18  ;;  %v1923_v14 = vld [vmem:[#allocation17_spill] sm:$0xff]  ;;  %v1924_v18 = vld [vmem:[#allocation18_spill] sm:$0xff]  ;;  %v1925_v20 = vld [vmem:[#allocation15_spill] sm:$0xff]  ;;  %vm816_vm0 = vcmp.lt.s32.totalorder %v797_v19, 1000 }
  0x8e   : > { %729 = vmatpush.msrb.mxu2 %v1481_v26  ;;  %749 = vmatpush.msrb.mxu3 %v1488_v29  ;;  %v766_v26 = vld [vmem:[%s1885_s1] sm:$0xff]  ;;  %v1186_v29 = vmov 0  }
  0x8f   : > { %689 = vmatpush.msrb.mxu0 %v1475_v24  ;;  %709 = vmatpush.msrb.mxu1 %v1478_v25  ;;  %v1926_v24 = vld [vmem:[#allocation16_spill] sm:$0xff]  ;;  %v685_v25 = vld [vmem:[%s1886_s2] sm:$0xff] }
  0x90   : > { %730 = vmatpush.msrb.mxu2 %v1501_v34  ;;  %750 = vmatpush.msrb.mxu3 %v1504_v35 }
  0x91   : > { %690 = vmatpush.msrb.mxu0 %v1491_v30  ;;  %710 = vmatpush.msrb.mxu1 %v1494_v31  ;;  %v817_v30 = vsel %vm816_vm0, 1, %v1186_v29 }
  0x92   : > { %731 = vmatpush.msrb.mxu2 %v1517_v40  ;;  %751 = vmatpush.msrb.mxu3 %v1520_v41 }
  0x93   : > { %691 = vmatpush.msrb.mxu0 %v1507_v36  ;;  %711 = vmatpush.msrb.mxu1 %v1514_v39 }
  0x94   : > { %732 = vmatpush.msrb.mxu2 %v1537_v48  ;;  %752 = vmatpush.msrb.mxu3 %v1540_v49 }
  0x95   : > { %692 = vmatpush.msrb.mxu0 %v1527_v44  ;;  %712 = vmatpush.msrb.mxu1 %v1530_v45 }
  0x96   : > { %733 = vmatpush.msrb.mxu2 %v1557_v56  ;;  %753 = vmatpush.msrb.mxu3 %v1560_v57 }
  0x97   : > { %693 = vmatpush.msrb.mxu0 %v1547_v52  ;;  %713 = vmatpush.msrb.mxu1 %v1550_v53 }
  0x98   : > { %734 = vmatpush.msrb.mxu2 %v1577_v3  ;;  %754 = vmatpush.msrb.mxu3 %v1580_v4 }
  0x99   : > { %694 = vmatpush.msrb.mxu0 %v1567_v60  ;;  %714 = vmatpush.msrb.mxu1 %v1570_v61 }
  0x9a   : > { %735 = vmatpush.msrb.mxu2 %v1597_v17  ;;  %755 = vmatpush.msrb.mxu3 %v1600_v21 }
  0x9b   : > { %695 = vmatpush.msrb.mxu0 %v1587_v10  ;;  %715 = vmatpush.msrb.mxu1 %v1590_v11 }
  0x9c   : > { %736 = vmatpush.msrb.mxu2 %v1617_v37  ;;  %756 = vmatpush.msrb.mxu3 %v1620_v38 }
  0x9d   : > { %696 = vmatpush.msrb.mxu0 %v1607_v27  ;;  %716 = vmatpush.msrb.mxu1 %v1610_v28 }
  0x9e   : > { %737 = vmatpush.msrb.mxu2 %v1915_v0  ;;  %757 = vmatpush.msrb.mxu3 %v1916_v1 }
  0x9f   : > { %697 = vmatpush.msrb.mxu0 %v1917_v2  ;;  %717 = vmatpush.msrb.mxu1 %v1918_v6 }
  0xa0   : > { %738 = vmatpush.msrb.mxu2 %v1919_v7  ;;  %758 = vmatpush.msrb.mxu3 %v1920_v8 }
  0xa1   : > { %698 = vmatpush.msrb.mxu0 %v1921_v12  ;;  %718 = vmatpush.msrb.mxu1 %v1922_v13 }
  0xa2   : > { %739 = vmatpush.msrb.mxu2 %v1923_v14  ;;  %759 = vmatpush.msrb.mxu3 %v1924_v18 }
  0xa3   : > { %699 = vmatpush.msrb.mxu0 %v1925_v20  ;;  %719 = vmatpush.msrb.mxu1 %v1926_v24 }
  0xa4   : > { %740 = vmatpush.msrb.mxu2 %v1697_v63  ;;  %760 = vmatpush.msrb.mxu3 %v1700_v15 }
  0xa5   : > { %700 = vmatpush.msrb.mxu0 %v1687_v55  ;;  %720 = vmatpush.msrb.mxu1 %v1690_v62  ;;  %v679_v62 = vlaneseq }
  0xa6   : > { %741 = vmatpush.msrb.mxu2 %v1717_v22  ;;  %761 = vmatpush.msrb.mxu3 %v1720_v23 }
  0xa7   : > { %742 = vmatmul.f32.vlgmr.msrb.gmra.mxu2 %v685_v25  ;;  %762 = vmatmul.f32.vlgmr.msrb.gmra.mxu3 %v685_v25  ;;  %vm681_vm0 = vcmp.lt.s32.totalorder %v679_v62, 512  ;;  %v800_v23 = vand.u32 127, %v679_v62 }
  0xa8   : > { %701 = vmatpush.msrb.mxu0 %v1707_v9  ;;  %721 = vmatpush.msrb.mxu1 %v1710_v54 }
  0xa9   : > { %702 = vmatmul.f32.vlgmr.msrb.gmra.mxu0 %v685_v25  ;;  %722 = vmatmul.f32.vlgmr.msrb.gmra.mxu1 %v685_v25  ;;  %v801_v51 = vadd.s32 128, %v800_v23  ;;  %v802_v0 = vadd.s32 256, %v800_v23  ;;  %v803_v8 = vadd.s32 384, %v800_v23  ;;  %v805_v12 = vadd.s32 %v804_v58, %v800_v23 }
  0xaa   : > { %1093 = vset.pattern.permute.xlu0 %v1186_v29  ;;  %1094 = vset.pattern.permute.xlu1 %v1186_v29 }
  0xab   : > { %769 = vperm.xlu0 %1093, %v766_v26   ;;  %819 = vperm.xlu1 %1094, %v817_v30   ;;  %v806_v13 = vadd.s32 %v804_v58, %v801_v51  ;;  %v807_v14 = vadd.s32 %v804_v58, %v802_v0 }
  0xb3   : > { %810 = vperm.xlu0 %1093, %v797_v19  }
 0x103   : > { %v558_v31 = vpop.f32.mrf.mxu0  ;;  %v578_v34 = vpop.f32.mrf.mxu1 }
 0x104   : > { %v621_v35 = vmax.f32 %v558_v31, 1e-30  ;;  %v622_v36 = vmax.f32 %v578_v34, 1e-30 }
 0x106   : > { %1095 = vrsqrt.f32 %v621_v35  ;;  %vm641_vm1 = vweird.f32 %v622_v36  ;;  %vm631_vm6 = vweird.f32 %v621_v35 }
 0x107   : > { %1097 = vrsqrt.f32 %v622_v36 }
 0x10a   : > { %v598_v39 = vpop.f32.mrf.mxu2  ;;  %v618_v40 = vpop.f32.mrf.mxu3 }
 0x10b   : > { %v623_v41 = vmax.f32 %v598_v39, 1e-30  ;;  %v624_v44 = vmax.f32 %v618_v40, 1e-30 }
 0x10c   : > { %v1096_v45 = vpop.eup %1095 }
 0x10d   : > { %v1098_v48 = vpop.eup %1097  ;;  %v626_v49 = vmul.f32 %v1096_v45, %v621_v35  ;;  %1099 = vrsqrt.f32 %v623_v41  ;;  %vm651_vm7 = vweird.f32 %v623_v41  ;;  %vm632_vm8 = vweird.f32 %v1096_v45 }
 0x10e   : > { %v636_v52 = vmul.f32 %v1098_v48, %v622_v36  ;;  %1101 = vrsqrt.f32 %v624_v44  ;;  %vm642_vm2 = vweird.f32 %v1098_v48  ;;  %vm661_vm10 = vweird.f32 %v624_v44  ;;  %vm633_vm14 = vmor %vm631_vm6, %vm632_vm8 }
 0x10f   : > { %v627_v56 = vmul.f32 %v1096_v45, %v626_v49  ;;  %vm643_vm3 = vmor %vm641_vm1, %vm642_vm2  ;;  %v808_v36 = vadd.s32 %v804_v58, %v803_v8 }
 0x110   : > { %v637_v53 = vmul.f32 %v1098_v48, %v636_v52 }
 0x111   : > { %v628_v10 = vmul.f32 0.5, %v627_v56 }
 0x112   : > { %v638_v57 = vmul.f32 0.5, %v637_v53 }
 0x113   : > { %v1100_v60 = vpop.eup %1099  ;;  %v629_v37 = vsub.f32 1.5, %v628_v10 }
 0x114   : > { %v1102_v61 = vpop.eup %1101  ;;  %v639_v3 = vsub.f32 1.5, %v638_v57  ;;  %v646_v4 = vmul.f32 %v1100_v60, %v623_v41  ;;  %vm652_vm4 = vweird.f32 %v1100_v60 }
 0x115   : > { %v656_v11 = vmul.f32 %v1102_v61, %v624_v44  ;;  %vm662_vm5 = vweird.f32 %v1102_v61  ;;  %v630_v63 = vmul.f32 %v1096_v45, %v629_v37  ;;  %vm653_vm9 = vmor %vm651_vm7, %vm652_vm4 }
 0x116   : > { %v647_v17 = vmul.f32 %v1100_v60, %v646_v4  ;;  %v640_v21 = vmul.f32 %v1098_v48, %v639_v3  ;;  %vm663_vm11 = vmor %vm661_vm10, %vm662_vm5 }
 0x117   : > { %v657_v27 = vmul.f32 %v1102_v61, %v656_v11  ;;  %v634_v22 = vsel %vm633_vm14, %v1096_v45, %v630_v63 }
 0x118   : > { %v648_v28 = vmul.f32 0.5, %v647_v17  ;;  %v644_v47 = vsel %vm643_vm3, %v1098_v48, %v640_v21 }
 0x119   : > { %v658_v38 = vmul.f32 0.5, %v657_v27  ;;  %v669_v16 = vrot.slane %v644_v47, 7 }
 0x11a   : > { %v649_v46 = vsub.f32 1.5, %v648_v28 }
 0x11b   : > { %v659_v54 = vsub.f32 1.5, %v658_v38  ;;  %v673_v42 = vsel %vm672_vm12, %v634_v22, %v669_v16 }
 0x11c   : > { %v650_v55 = vmul.f32 %v1100_v60, %v649_v46 }
 0x11d   : > { %v660_v15 = vmul.f32 %v1102_v61, %v659_v54  ;;  %v770_v5 = vpop.permute.xlu0 %769  ;;  %v820_v6 = vpop.permute.xlu1 %819 }
 0x11e   : > { %v654_v32 = vsel %vm653_vm9, %v1100_v60, %v650_v55  ;;  %vm821_vm1 = vcmp.eq.s32.totalorder %v820_v6, 1 }
 0x11f   : > { %v670_v33 = vrot.slane %v654_v32, 6  ;;  %v664_v59 = vsel %vm663_vm11, %v1102_v61, %v660_v15 }
 0x120   : > { %v671_v9 = vrot.slane %v664_v59, 5 }
 0x122   : > { %v675_v43 = vsel %vm674_vm13, %v670_v33, %v671_v9 }
 0x123   : > { %v677_v50 = vsel %vm676_vm15, %v673_v42, %v675_v43 }
 0x124   : > { %683 = vst.msk [vmem:[#allocation2] sm:$0xf] %vm681_vm0, %v677_v50 }
 0x125   : > { %v811_v7 = vpop.permute.xlu0 %810 }
 0x126   : > { %v703_v1 = vpop.f32.mrf.mxu0  ;;  %v723_v2 = vpop.f32.mrf.mxu1  ;;  %vm812_vm2 = vcmp.eq.s32.totalorder %v805_v12, %v811_v7  ;;  %vm813_vm3 = vcmp.eq.s32.totalorder %v806_v13, %v811_v7  ;;  %vm814_vm4 = vcmp.eq.s32.totalorder %v807_v14, %v811_v7  ;;  %vm815_vm7 = vcmp.eq.s32.totalorder %v808_v36, %v811_v7 }
 0x127   : > { %v772_v24 = vmul.f32 %v770_v5, %v703_v1  ;;  %v773_v25 = vmul.f32 %v770_v5, %v723_v2  ;;  %vm1810_vm5 = vmand %vm812_vm2, %vm821_vm1 }
 0x128   : > { %vm1815_vm6 = vmand %vm813_vm3, %vm821_vm1 }
 0x129   : > { %vm1824_vm8 = vmand %vm814_vm4, %vm821_vm1 }
 0x12a   : > { %v743_v18 = vpop.f32.mrf.mxu2  ;;  %v763_v19 = vpop.f32.mrf.mxu3  ;;  %vm1831_vm9 = vmand %vm815_vm7, %vm821_vm1 }
 0x12b   : > { %v684_v20 = vld [vmem:[#allocation2] sm:$0xf]  ;;  %v774_v26 = vmul.f32 %v770_v5, %v743_v18  ;;  %v775_v29 = vmul.f32 %v770_v5, %v763_v19 }
 0x12c   : > { %v777_v30 = vperm.slane %v684_v20, 0  ;;  %v778_v31 = vperm.slane %v684_v20, 1  ;;  %v779_v34 = vperm.slane %v684_v20, 2  ;;  %v780_v35 = vperm.slane %v684_v20, 3 }
 0x12e   : > { %v785_v39 = vmul.f32 %v777_v30, %v772_v24  ;;  %v786_v40 = vmul.f32 %v778_v31, %v773_v25  ;;  %v787_v41 = vmul.f32 %v779_v34, %v774_v26  ;;  %v788_v44 = vmul.f32 %v780_v35, %v775_v29 }
 0x130   : > { %v1022_v48 = vclamps-f32 %v785_v39, 1.0  ;;  %v1023_v49 = vclamps-f32 %v786_v40, 1.0  ;;  %v1024_v52 = vclamps-f32 %v787_v41, 1.0  ;;  %v1025_v60 = vclamps-f32 %v788_v44, 1.0 }
 0x132   : > { %v826_v56 = vsel %vm1810_vm5, %v1022_v48, 0.0  ;;  %v827_v57 = vsel %vm1815_vm6, %v1023_v49, 0.0  ;;  %v828_v4 = vsel %vm1824_vm8, %v1024_v52, 0.0  ;;  %v829_v17 = vsel %vm1831_vm9, %v1025_v60, 0.0 }
 0x133   : > { %v830_v3 = vadd.f32 %v827_v57, %v826_v56 }
 0x135   : > { %v831_v11 = vadd.f32 %v830_v3, %v828_v4 }
 0x137   : > { %v832_v21 = vadd.f32 %v831_v11, %v829_v17 }
 0x139   : > { %833 = vadd.xlane.f32.xlu1 %v832_v21 }
 0x1ac   : > { %v834_v27 = vpop.xlane.xlu1 %833 }
 0x1ad   : > { %v835_v28 = vmul.f32 %v834_v27, %v834_v27  ;;  %v1027_v59 = vadd.f32 0.87758255, %v834_v27  ;;  %v850_v5 = vmul.f32 0.87758255, %v834_v27  ;;  %v1028_v23 = vadd.f32 -0.23971277, %v834_v27 }
 0x1af   : > { %v836_v37 = vsub.f32 1.0, %v835_v28  ;;  %vm854_vm12 = vcmp.le.f32.partialorder %v1027_v59, 0.0 }
 0x1b1   : > { %v837_v38 = vmax.f32 %v836_v37, 0.0 }
 0x1b3   : > { %1103 = vrsqrt.f32 %v837_v38  ;;  %vm845_vm10 = vcmp.eq.f32.partialorder %v837_v38, inf  ;;  %v848_v16 = vand.u32 2147483648, %v837_v38  ;;  %vm847_vm11 = vcmp.eq.f32.partialorder %v837_v38, 0.0 }
 0x1b9   : > { %v1104_v46 = vpop.eup %1103 }
 0x1ba   : > { %v839_v47 = vmul.f32 %v1104_v46, %v837_v38 }
 0x1bc   : > { %v840_v54 = vmul.f32 %v1104_v46, %v839_v47 }
 0x1be   : > { %v841_v55 = vmul.f32 0.5, %v840_v54 }
 0x1c0   : > { %v842_v62 = vsub.f32 1.5, %v841_v55 }
 0x1c2   : > { %v843_v63 = vmul.f32 %v1104_v46, %v842_v62 }
 0x1c4   : > { %v844_v15 = vmul.f32 %v843_v63, %v837_v38 }
 0x1c6   : > { %v846_v32 = vsel %vm845_vm10, %v837_v38, %v844_v15 }
 0x1c7   : > { %v849_v33 = vsel %vm847_vm11, %v848_v16, %v846_v32 }
 0x1c8   : > { %v851_v9 = vmul.f32 0.47942555, %v849_v33 }
 0x1ca   : > { %v852_v22 = vsub.f32 %v850_v5, %v851_v9 }
 0x1cc   : > { %v856_v42 = vsel %vm854_vm12, %v1028_v23, %v852_v22 }
 0x1cd   : > { %v857_v43 = vsel %vm1810_vm5, %v856_v42, %v1022_v48  ;;  %v858_v50 = vsel %vm1815_vm6, %v856_v42, %v1023_v49  ;;  %v859_v51 = vsel %vm1824_vm8, %v856_v42, %v1024_v52  ;;  %v860_v58 = vsel %vm1831_vm9, %v856_v42, %v1025_v60 }
 0x1ce   : > { %v861_v0 = vmul.f32 64.0, %v857_v43  ;;  %v862_v1 = vmul.f32 64.0, %v858_v50  ;;  %v863_v2 = vmul.f32 64.0, %v859_v51  ;;  %v864_v6 = vmul.f32 64.0, %v860_v58 }
 0x1d0   : > { %865 = vst [vmem:[%s394_s18] sm:$0xff] %v861_v0 }
 0x1d1   : > { %866 = vst [vmem:[%s394_s18 + $0x8] sm:$0xff] %v862_v1 }
 0x1d2   : > { %867 = vst [vmem:[%s394_s18 + $0x10] sm:$0xff] %v863_v2 }
 0x1d3   : > { %868 = vst [vmem:[%s394_s18 + $0x18] sm:$0xff] %v864_v6 }
 0x1d4   : > { %1132 = shalt.err (!%p1129_p7)
}
 0x1d5   : > { %1036 = dma.vmem_to_hbm [thread:$0]  (%p1251_p5), %s886_s9, 512, %s888_s11, %s870_s12  }
 0x1d6 PF: > { %s899_s10 = sand.u32 1, %s1163_s15   ;;  %p1039_p8 = pnand %p1015_p10, %p1262_p9 }
 0x1d7   : > { %s900_s30 = scalar_lea.sflag [#allocation5], %s899_s10 }
 0x1d8   : > { %p1040_p11 = pneg %p1039_p8 }
 0x1da   : > { %1158 = dma.done.wait (%p1040_p11), %s900_s30, 512  }
 0x1db   : > { %1160 = vsyncadd (%p1040_p11), %s900_s30, 4294966784  ;;  %s17_s20 = sadd.s32 1, %s1183_s20   ;;  %s1935_s15 = smov %s1167_s16 }
 0x1dc   : > { %p14_p12 = scmp.ge.s32.totalorder %s17_s20, 4   ;;  %s1936_s16 = smov %s1171_s17 }
 0x1dd   : > { %s1937_s17 = smov %s1260_s27  ;;  %s1938_s18 = smov %s1179_s19 }
 0x1de   : > { %s1939_s19 = smov %s1941_s23  ;;  %16 = sbr.rel (!%p14_p12) target bundleno = 4 (0x4), region = 112 }
 0x1e3   :  { %906 = vsyncpa [#allocation5], 1 }
 0x1e4   :  { %908 = vsyncpa [#allocation5 + $0x1], 1 }

</bundles_post_ra>
